<compile_context>
chip_gen: v7x
topology: tpu7x:2x2x1
jax: 0.10.0
libtpu: 0.0.40
codegen_flags: <defaults>
</compile_context>

<pallas_src>
import functools

import jax
import jax.numpy as jnp
from jax.experimental import pallas as pl
from jax.experimental.pallas import tpu as pltpu


def _round_up(n: int, m: int) -> int:
    return ((n + m - 1) // m) * m


# ----------------------------------------------------------------------------------
# Kernels
# ----------------------------------------------------------------------------------
def _poly_kernel_batch_major(x_ref, w_ref, b_ref, o_ref, *, degree):
    """Batch-major layout (PyTorch convention): x tile is (TB, D).

    x_ref: (TB, D) VMEM (native dtype)   w_ref: (degree, D) VMEM, w[k] = coeff of x**(k+1)
    b_ref: (1,)    SMEM (folded bias)    o_ref: (1, TB) VMEM (lane-dense output slab)
    """
    x = x_ref[...].astype(jnp.float32)            # cast in-kernel (no host astype)
    w = w_ref[...]                                # (degree, D) f32
    # Horner: per_feat = x * (w[0] + x * (w[1] + ... + x * w[degree-1]))
    per_feat = x * w[degree - 1]
    for k in range(degree - 2, -1, -1):           # static unroll; degree is a small int
        per_feat = (per_feat + w[k]) * x
    y = jnp.sum(per_feat, axis=-1) + b_ref[0]     # (TB,)  lane reduce (XLU)
    o_ref[...] = y.reshape(1, -1).astype(o_ref.dtype)


def _poly_kernel_feature_major(x_ref, w_ref, b_ref, o_ref, *, degree):
    """Feature-major layout: x tile is (D, TB) — samples on lanes, features on sublanes.

    x_ref: (D, TB) VMEM (native dtype)   w_ref: (D, degree) VMEM, w[:, k] = coeff of x**(k+1)
    b_ref: (1,)    SMEM (folded bias)    o_ref: (1, TB) VMEM (lane-dense output slab)
    """
    x = x_ref[...].astype(jnp.float32)            # (D, TB)
    w = w_ref[...]                                # (D, degree)
    per_feat = x * w[:, degree - 1:degree]        # (D, 1) lane-broadcast
    for k in range(degree - 2, -1, -1):
        per_feat = (per_feat + w[:, k:k + 1]) * x
    # Per-sample reduce over sublanes lands directly lane-dense — no relayout needed.
    y = jnp.sum(per_feat, axis=0, keepdims=True) + b_ref[0]   # (1, TB)
    o_ref[...] = y.astype(o_ref.dtype)


# ----------------------------------------------------------------------------------
# Tile-size selection (byte budget, not a fixed row count)
# ----------------------------------------------------------------------------------
def _choose_tb(B: int, D: int, itemsize: int) -> int:
    HBM_BUDGET = 2 << 20       # ~2 MiB of real x bytes per grid step
    VMEM_BUDGET = 4 << 20      # lane-padded, double-buffered x-block VMEM budget
    tb_hbm = max(1, HBM_BUDGET // max(1, D * itemsize))
    tb_vmem = max(1, VMEM_BUDGET // (2 * _round_up(D, 128) * itemsize))
    tb = min(tb_hbm, tb_vmem)
    if tb >= B:
        if B >= 4096:
            # Keep >=2 tiles so the "parallel" batch axis can shard across both
            # TensorCores on v7x instead of collapsing to a single grid step.
            return _round_up(-(-B // 2), 128)
        return B               # block == full array dims: always legal, no masking
    # Tiled case: lane-dense (1, tb) output block requires tb % 128 == 0.
    return max(128, (tb // 128) * 128)


# ----------------------------------------------------------------------------------
# Wrapper
# ----------------------------------------------------------------------------------
def polynomial_classifier(x, weight, bias, *, degree, feature_major=False, tb=None):
    """PolynomialClassifier forward.

    x: (B, D)  (or (D, B) if feature_major=True — no host transpose is performed)
    weight: (1, D*(degree+1)), bias: (1,)   ->   (B, 1) float32
    """
    if feature_major:
        D, B = x.shape
    else:
        B, D = x.shape
    F = D * (degree + 1)
    assert weight.shape == (1, F), (weight.shape, F)

    w = weight.astype(jnp.float32).reshape(degree + 1, D)
    # Fold the x**0 (constant) feature block and the Linear bias into one scalar.
    bias_eff = (bias.astype(jnp.float32).reshape(()) + w[0].sum()).reshape(1)

    if degree == 0:
        # Degenerate case: every output row is the same constant.
        return jnp.full((B, 1), bias_eff[0], dtype=jnp.float32)

    w_poly = w[1:]                                    # (degree, D): coeffs of x**1..x**degree

    if tb is None:
        tb = _choose_tb(B, D, x.dtype.itemsize)
    else:
        tb = min(int(tb), B)
    if tb < B:
        assert tb % 128 == 0, "tiled batch block must be a multiple of 128 (lane-dense out)"
    num_tiles = pl.cdiv(B, tb)                        # ragged last block handled by Pallas

    cost = pl.CostEstimate(
        flops=2 * B * D * degree,
        transcendentals=0,
        bytes_accessed=B * D * x.dtype.itemsize + (B + degree * D + 1) * 4)
    cparams = pltpu.CompilerParams(
        dimension_semantics=("parallel",),
        vmem_limit_bytes=32 * 1024 * 1024)            # explicit: v5e default is only 16 MiB

    if feature_major:
        kernel = functools.partial(_poly_kernel_feature_major, degree=degree)
        in_specs = [
            pl.BlockSpec((D, tb), lambda i: (0, i)),             # x tile, samples on lanes
            pl.BlockSpec((D, degree), lambda i: (0, 0)),         # weights (resident)
            pl.BlockSpec(memory_space=pltpu.MemorySpace.SMEM),   # folded bias scalar
        ]
        args = (x, w_poly.T, bias_eff)
    else:
        kernel = functools.partial(_poly_kernel_batch_major, degree=degree)
        in_specs = [
            pl.BlockSpec((tb, D), lambda i: (i, 0)),             # x tile (pipelined)
            pl.BlockSpec((degree, D), lambda i: (0, 0)),         # weights (resident)
            pl.BlockSpec(memory_space=pltpu.MemorySpace.SMEM),   # folded bias scalar
        ]
        args = (x, w_poly, bias_eff)

    out = pl.pallas_call(
        kernel,
        out_shape=jax.ShapeDtypeStruct((1, B), jnp.float32),
        grid=(num_tiles,),
        in_specs=in_specs,
        out_specs=pl.BlockSpec((1, tb), lambda i: (0, i)),       # lane-dense output slab
        compiler_params=cparams,
        cost_estimate=cost,
    )(*args)

    return out.reshape(B, 1)


# ----------------------------------------------------------------------------------
if __name__ == "__main__":
    degree = 3
    input_dim = 16
    feat_dim = input_dim * (degree + 1)

    key = jax.random.PRNGKey(0)
    kx, kw, kb, kx2 = jax.random.split(key, 4)

    # Deterministic parameters mimicking nn.Linear init: U(-1/sqrt(fan_in), 1/sqrt(fan_in)).
    bound = 1.0 / (feat_dim ** 0.5)
    weight = jax.random.uniform(kw, (1, feat_dim), jnp.float32, -bound, bound)
    bias = jax.random.uniform(kb, (1,), jnp.float32, -bound, bound)

    def reference(xv):
        x_poly = jnp.concatenate([xv ** i for i in range(degree + 1)], axis=1)
        return x_poly @ weight.T + bias

    # 1) Small single-tile case (block == full array dims, no masking).
    x_small = jax.random.normal(kx, (8, input_dim), jnp.float32)
    out_small = jax.block_until_ready(
        polynomial_classifier(x_small, weight, bias, degree=degree))
    assert out_small.shape == (8, 1)
    assert jnp.allclose(out_small, reference(x_small), atol=1e-5, rtol=1e-5)

    # 2) Tiled + ragged case: B % tb != 0 exercises the masked last block
    #    (no host-side jnp.pad anymore — Pallas masks the out-of-range output lanes).
    x_big = jax.random.normal(kx2, (600, input_dim), jnp.float32)
    out_big = jax.block_until_ready(
        polynomial_classifier(x_big, weight, bias, degree=degree, tb=128))
    assert out_big.shape == (600, 1)
    assert jnp.allclose(out_big, reference(x_big), atol=1e-5, rtol=1e-5)

    # 3) Feature-major path: caller supplies x as (D, B); samples sit on lanes, the
    #    per-sample reduce is a sublane reduce into the lane-dense output slab.
    #    (The transpose below is test-only input construction, not part of the op.)
    x_fm = x_big.T
    out_fm = jax.block_until_ready(
        polynomial_classifier(x_fm, weight, bias, degree=degree,
                              feature_major=True, tb=128))
    assert out_fm.shape == (600, 1)
    assert jnp.allclose(out_fm, reference(x_big), atol=1e-5, rtol=1e-5)

    print("KERNEL_OK")
</pallas_src>

<mosaic_0001>
module attributes {stable_mosaic.version = 11 : i64} {
  func.func @_poly_kernel_batch_major(%arg0: i32, %arg1: memref<8x16xf32, #tpu.memory_space<vmem>>, %arg2: memref<3x16xf32, #tpu.memory_space<vmem>>, %arg3: memref<1xf32, #tpu.memory_space<smem>>, %arg4: memref<1x8xf32, #tpu.memory_space<vmem>>) attributes {dimension_semantics = [#tpu.dimension_semantics<parallel>], iteration_bounds = array<i64: 1>, scalar_prefetch = 0 : i64, scratch_operands = 0 : i64, tpu.core_type = #tpu.core_type<tc>, window_params = [{transform_indices = @transform_0, window_bounds = array<i64: 8, 16>}, {pipeline_mode = #tpu.pipeline_mode<synchronous>, transform_indices = @transform_1, window_bounds = array<i64: 3, 16>}, {transform_indices = @transform_2, window_bounds = array<i64: 1>}, {transform_indices = @transform_3, window_bounds = array<i64: 1, 8>}]} {
    %c0 = arith.constant 0 : index
    %c0_0 = arith.constant 0 : index
    %0 = vector.load %arg1[%c0, %c0_0] : memref<8x16xf32, #tpu.memory_space<vmem>>, vector<8x16xf32>
    %c0_1 = arith.constant 0 : index
    %c0_2 = arith.constant 0 : index
    %1 = vector.load %arg2[%c0_1, %c0_2] : memref<3x16xf32, #tpu.memory_space<vmem>>, vector<3x16xf32>
    %2 = vector.extract_strided_slice %1 {offsets = [2, 0], sizes = [1, 16], strides = [1, 1]} : vector<3x16xf32> to vector<1x16xf32>
    %3 = vector.shape_cast %2 : vector<1x16xf32> to vector<16xf32>
    %4 = vector.shape_cast %3 : vector<16xf32> to vector<1x16xf32>
    %5 = vector.broadcast %4 : vector<1x16xf32> to vector<8x16xf32>
    %6 = arith.mulf %0, %5 : vector<8x16xf32>
    %7 = vector.extract_strided_slice %1 {offsets = [1, 0], sizes = [1, 16], strides = [1, 1]} : vector<3x16xf32> to vector<1x16xf32>
    %8 = vector.shape_cast %7 : vector<1x16xf32> to vector<16xf32>
    %9 = vector.shape_cast %8 : vector<16xf32> to vector<1x16xf32>
    %10 = vector.broadcast %9 : vector<1x16xf32> to vector<8x16xf32>
    %11 = arith.addf %6, %10 : vector<8x16xf32>
    %12 = arith.mulf %11, %0 : vector<8x16xf32>
    %13 = vector.extract_strided_slice %1 {offsets = [0, 0], sizes = [1, 16], strides = [1, 1]} : vector<3x16xf32> to vector<1x16xf32>
    %14 = vector.shape_cast %13 : vector<1x16xf32> to vector<16xf32>
    %15 = vector.shape_cast %14 : vector<16xf32> to vector<1x16xf32>
    %16 = vector.broadcast %15 : vector<1x16xf32> to vector<8x16xf32>
    %17 = arith.addf %12, %16 : vector<8x16xf32>
    %18 = arith.mulf %17, %0 : vector<8x16xf32>
    %cst = arith.constant dense<0.000000e+00> : vector<8xf32>
    %19 = vector.multi_reduction <add>, %18, %cst [1] : vector<8x16xf32> to vector<8xf32>
    %c0_3 = arith.constant 0 : index
    %20 = memref.load %arg3[%c0_3] : memref<1xf32, #tpu.memory_space<smem>>
    %21 = vector.broadcast %20 : f32 to vector<8xf32>
    %22 = arith.addf %19, %21 : vector<8xf32>
    %23 = vector.shape_cast %22 : vector<8xf32> to vector<1x8xf32>
    %c0_4 = arith.constant 0 : index
    %c0_5 = arith.constant 0 : index
    %24 = vector.load %arg4[%c0_4, %c0_5] : memref<1x8xf32, #tpu.memory_space<vmem>>, vector<1x8xf32>
    tpu.vector_store %arg4[%c0_4, %c0_5], %23 {strides = array<i32>} : memref<1x8xf32, #tpu.memory_space<vmem>>, vector<1x8xf32>,
    return
  }
  func.func @transform_0(%arg0: i32) -> (i32, i32) {
    %c0_i32 = arith.constant 0 : i32
    %c0_i32_0 = arith.constant 0 : i32
    return %arg0, %c0_i32 : i32, i32
  }
  func.func @transform_1(%arg0: i32) -> (i32, i32) {
    %c0_i32 = arith.constant 0 : i32
    %c0_i32_0 = arith.constant 0 : i32
    %c0_i32_1 = arith.constant 0 : i32
    return %c0_i32, %c0_i32_0 : i32, i32
  }
  func.func @transform_2(%arg0: i32) -> i32 {
    %c0_i32 = arith.constant 0 : i32
    %c0_i32_0 = arith.constant 0 : i32
    return %c0_i32 : i32
  }
  func.func @transform_3(%arg0: i32) -> (i32, i32) {
    %c0_i32 = arith.constant 0 : i32
    %c0_i32_0 = arith.constant 0 : i32
    return %c0_i32, %arg0 : i32, i32
  }
}

</mosaic_0001>

<bundles_post_ra>
// kernel: tpu_custom_call.1
= control target key start
LH: loop header
LB: loop body
LE: loop exit
PB: predicated region body
PF: predicated region fallthrough
CT: control target
= control target key end

     0   :  { %9 = vsyncpa [#allocation4], 0  ;;  %s181_s0 = inlined_call_operand.hbm [shape: f32[8,16], index: 0, kind: input, shape index: {}]   ;;  %s182_s1 = inlined_call_operand.vmem [shape: f32[3,16], index: 1, kind: input, shape index: {}]   ;;  %s183_s2 = inlined_call_operand.<no memory space> [shape: f32[1], index: 2, kind: input, shape index: {}]   ;;  %s184_s3 = inlined_call_operand.hbm [shape: f32[1,8], index: 3, kind: output, shape index: {}]  }
   0x1   :  { %10 = vsyncpa [#allocation5], 0  ;;  %s129_s12 = smov [#allocation3]   ;;  %s81_s16 = scalar_lea.hbm %s181_s0, 128 }
   0x2   :  { %s17_s13 = sshll.u32 %s129_s12, 4  ;;  %p82_p0 = scmp.ne.s32.totalorder %s181_s0, %s81_s16  ;;  %s18_s13 = int_to_ptr.vmem [resolvable:$true] %s17_s13 }
   0x3   :  { %p85_p1 = scmp.lt.u32.totalorder %s81_s16, %s181_s0 }
   0x5   :  { %p87_p2 = pnand %p85_p1, %p82_p0 }
   0x7   :  { %90 = shalt.err (!%p87_p2)
}
   0x8   :  { %s91_s21 = scalar_lea.vmem %s18_s13, 128  ;;  %p96_p4 = scmp.lt.s32.totalorder %s18_s13, %s18_s13 }
   0x9   :  { %p92_p3 = scmp.ne.s32.totalorder %s18_s13, %s91_s21  ;;  %p97_p5 = scmp.lt.s32.totalorder %s91_s21, %s91_s21 }
   0xb   :  { %p98_p6 = por %p97_p5, %p96_p4 }
   0xd   :  { %p99_p7 = pnand %p98_p6, %p92_p3 }
   0xf   :  { %102 = shalt.err (!%p99_p7)
}
  0x10   :  { %20 = dma.hbm_to_vmem [thread:$0]  %s181_s0, 128, %s18_s13, [#allocation4]  }
  0x11   :  { %125 = dma.done.wait [#allocation4], 128  }
  0x12   :  { %126 = vsyncadd [#allocation4], 4294967168  ;;  %v30_v0 = vlaneseq  ;;  %v28_v4 = vld [vmem:[#allocation3] sm:$0xff]  ;;  %vm47_vm0 = vcmask 130048   ;;  %v52_v18 = vstv %s183_s2  ;;  %vm62_vm1 = vcmask 57344  }
  0x13   :  { %v29_v5 = vld [vmem:[%s182_s1] sm:$0x7]  ;;  %s130_s1 = smov [#allocation6]  }
  0x14   :  { %v31_v1 = vshrl.u32 %v30_v0, 7  ;;  %v56_v16 = vand.u32 127, %v30_v0  ;;  %s70_s27 = sshll.u32 %s130_s1, 4  ;;  %s71_s27 = int_to_ptr.vmem [resolvable:$true] %s70_s27 }
  0x15   :  { %s103_s28 = scalar_lea.vmem %s71_s27, 16  ;;  %s107_s29 = scalar_lea.vmem %s71_s27, 32 }
  0x16   :  { %v32_v2 = vsub.s32 2, %v31_v1  ;;  %v37_v3 = vsub.s32 1, %v31_v1  ;;  %v43_v8 = vsub.s32 0, %v31_v1  ;;  %v59_v17 = vsub.s32 %v56_v16, %v31_v1  ;;  %p104_p8 = scmp.ne.s32.totalorder %s71_s27, %s103_s28  ;;  %p108_p9 = scmp.lt.s32.totalorder %s71_s27, %s71_s27 }
  0x17   :  { %p109_p10 = scmp.lt.s32.totalorder %s107_s29, %s103_s28 }
  0x18   :  { %v33_v6 = vrot.slane %v29_v5, %v32_v2  ;;  %v38_v7 = vrot.slane %v29_v5, %v37_v3  ;;  %v44_v11 = vrot.slane %v29_v5, %v43_v8 }
  0x19   :  { %p110_p11 = por %p109_p10, %p108_p9 }
  0x1a   :  { %v34_v9 = vmul.f32 %v33_v6, %v28_v4 }
  0x1b   :  { %p111_p12 = pnand %p110_p11, %p104_p8 }
  0x1c   :  { %v39_v10 = vadd.f32 %v38_v7, %v34_v9 }
  0x1e   :  { %v40_v12 = vmul.f32 %v39_v10, %v28_v4 }
  0x20   :  { %v45_v13 = vadd.f32 %v44_v11, %v40_v12 }
  0x22   :  { %v46_v14 = vmul.f32 %v45_v13, %v28_v4 }
  0x24   :  { %v48_v15 = vsel %vm47_vm0, %v46_v14, 0.0 }
  0x25   :  { %49 = vadd.xlane.f32.xlu0 %v48_v15 }
  0xb2   :  { %v50_v19 = vpop.xlane.xlu0 %49 }
  0xb3   :  { %v53_v20 = vadd.f32 %v52_v18, %v50_v19 }
  0xb5   :  { %v60_v21 = vrot.slane %v53_v20, %v59_v17 }
  0xb7   :  { %63 = vst.msk [vmem:[#allocation6] sm:$0x1] %vm62_vm1, %v60_v21 }
  0xb8   :  { %114 = shalt.err (!%p111_p12)
}
  0xb9   :  { %s115_s2 = scalar_lea.hbm %s184_s3, 16 }
  0xba   :  { %p116_p13 = scmp.ne.s32.totalorder %s184_s3, %s115_s2  ;;  %p119_p0 = scmp.lt.u32.totalorder %s115_s2, %s184_s3 }
  0xbc   :  { %p121_p1 = pnand %p119_p0, %p116_p13 }
  0xbe   :  { %124 = shalt.err (!%p121_p1)
}
  0xbf   :  { %73 = dma.vmem_to_hbm [thread:$0]  %s71_s27, 16, %s184_s3, [#allocation5]  }
  0xc0   :  { %127 = dma.done.wait [#allocation5], 16  }
  0xc1   :  { %128 = vsyncadd [#allocation5], 4294967280 }
  0xc2   :  { %77 = vsyncpa [#allocation4], 1 }
  0xc3   :  { %78 = vsyncpa [#allocation5], 1 }

</bundles_post_ra>
